<compile_context>
chip_gen: v7x
topology: tpu7x:2x2x1
jax: 0.10.0
libtpu: 0.0.40
codegen_flags: <defaults>
</compile_context>

<pallas_src>
import jax
import jax.numpy as jnp
from jax.experimental import pallas as pl
from jax.experimental.pallas import tpu as pltpu


def _round_up(n, m):
    return ((n + m - 1) // m) * m


def shift_and_scale_kernel(scale1_ref, shift_ref, x_ref, o_ref):
    # scale1_ref: (TR, 1) f32 -- precomputed (1 + scale) per row (row = (b, c))
    # shift_ref:  (TR, 1) f32 -- precomputed shift per row
    # x_ref:      (TR, THW)   -- input tile, rows dense on sublanes, spatial on lanes
    # o_ref:      (TR, THW)   -- output tile
    x = x_ref[...].astype(jnp.float32)
    o_ref[...] = (x * scale1_ref[...] + shift_ref[...]).astype(o_ref.dtype)


def _tile_sizes(rows, hw, itemsize):
    """Pick (tile_r, tile_hw): lane-dense (128-mult), sublane-dense, ~2 MiB blocks."""
    sub = 8 if itemsize >= 4 else (16 if itemsize == 2 else 32)
    budget = 2 * 1024 * 1024                       # bytes per x block
    max_lanes = max(128, (budget // (sub * itemsize)) // 128 * 128)
    tile_hw = min(_round_up(hw, 128), max_lanes)
    max_rows = max(sub, (budget // (tile_hw * itemsize)) // sub * sub)
    tile_r = min(_round_up(rows, sub), max_rows)
    return tile_r, tile_hw


def shift_and_scale(x, cond, weight, bias):
    """x: (B, C, H, W); cond: (B, Cf); weight: (2C, Cf) [PyTorch layout]; bias: (2C,)."""
    B, C, H, W = x.shape
    HW = H * W
    R = B * C
    assert weight.shape[0] == 2 * C

    # --- Hoisted conditioning path (tiny matmul; leave to XLA) ---
    y = (jax.nn.silu(cond.astype(jnp.float32))
         @ weight.astype(jnp.float32).T
         + bias.astype(jnp.float32))                        # (B, 2C)
    # torch.chunk(2, dim=1): first half -> shift, second half -> scale.
    shift = y[:, :C].reshape(R, 1)                          # f32
    scale1 = (1.0 + y[:, C:]).reshape(R, 1)                 # f32, (1 + scale)

    # --- Row/lane tiling; no padded copies, Pallas masks the ragged tail ---
    itemsize = jnp.dtype(x.dtype).itemsize
    tile_r, tile_hw = _tile_sizes(R, HW, itemsize)
    grid = (pl.cdiv(R, tile_r), pl.cdiv(HW, tile_hw))       # row axis slower

    x_flat = x.reshape(R, HW)                               # contiguous: free reshape

    cost = pl.CostEstimate(
        flops=2 * R * HW,
        transcendentals=0,
        bytes_accessed=2 * R * HW * itemsize + 2 * R * 4,
    )

    out_flat = pl.pallas_call(
        shift_and_scale_kernel,
        out_shape=jax.ShapeDtypeStruct((R, HW), x.dtype),
        grid_spec=pltpu.PrefetchScalarGridSpec(
            num_scalar_prefetch=0,
            grid=grid,
            in_specs=[
                pl.BlockSpec((tile_r, 1), lambda r, t: (r, 0)),        # (1+scale)
                pl.BlockSpec((tile_r, 1), lambda r, t: (r, 0)),        # shift
                pl.BlockSpec((tile_r, tile_hw), lambda r, t: (r, t)),  # x tile
            ],
            out_specs=pl.BlockSpec((tile_r, tile_hw), lambda r, t: (r, t)),
        ),
        compiler_params=pltpu.CompilerParams(
            dimension_semantics=("parallel", "parallel"),
            vmem_limit_bytes=32 * 1024 * 1024,   # safe on v5e/v6e/v7x
        ),
        cost_estimate=cost,
    )(scale1, shift, x_flat)

    return out_flat.reshape(B, C, H, W)                     # contiguous: free reshape


def _reference(x, cond, weight, bias):
    # Pure-JAX reference mirroring the PyTorch forward.
    s = jax.nn.silu(cond)
    y = s @ weight.T + bias                                  # (B, 2C)
    Fc = x.shape[1]
    shift, scale = y[:, :Fc], y[:, Fc:]
    return x * (1.0 + scale[:, :, None, None]) + shift[:, :, None, None]


if __name__ == "__main__":
    B, C, H, W = 2, 4, 16, 16       # features = 4
    Cf = 8                          # cond_features = 8

    key = jax.random.PRNGKey(0)
    k1, k2, k3, k4 = jax.random.split(key, 4)

    x = jax.random.normal(k1, (B, C, H, W), dtype=jnp.float32)
    cond = jax.random.normal(k2, (B, Cf), dtype=jnp.float32)
    # Deterministic "Linear(cond_features, 2*features)" parameters.
    weight = jax.random.normal(k3, (2 * C, Cf), dtype=jnp.float32) * 0.1
    bias = jax.random.normal(k4, (2 * C,), dtype=jnp.float32) * 0.1

    out = shift_and_scale(x, cond, weight, bias)
    out = jax.block_until_ready(out)

    ref = _reference(x, cond, weight, bias)
    assert out.shape == (B, C, H, W)
    assert jnp.allclose(out, ref, atol=1e-5, rtol=1e-5)

    print("KERNEL_OK")
</pallas_src>

<mosaic_0001>
module attributes {stable_mosaic.version = 11 : i64} {
  func.func @shift_and_scale_kernel(%arg0: i32, %arg1: i32, %arg2: memref<8x1xf32, #tpu.memory_space<vmem>>, %arg3: memref<8x1xf32, #tpu.memory_space<vmem>>, %arg4: memref<8x256xf32, #tpu.memory_space<vmem>>, %arg5: memref<8x256xf32, #tpu.memory_space<vmem>>) attributes {dimension_semantics = [#tpu.dimension_semantics<parallel>, #tpu.dimension_semantics<parallel>], iteration_bounds = array<i64: 1, 1>, scalar_prefetch = 0 : i64, scratch_operands = 0 : i64, tpu.core_type = #tpu.core_type<tc>, window_params = [{transform_indices = @transform_0, window_bounds = array<i64: 8, 1>}, {transform_indices = @transform_1, window_bounds = array<i64: 8, 1>}, {transform_indices = @transform_2, window_bounds = array<i64: 8, 256>}, {transform_indices = @transform_3, window_bounds = array<i64: 8, 256>}]} {
    %c0 = arith.constant 0 : index
    %c0_0 = arith.constant 0 : index
    %0 = vector.load %arg4[%c0, %c0_0] : memref<8x256xf32, #tpu.memory_space<vmem>>, vector<8x256xf32>
    %c0_1 = arith.constant 0 : index
    %c0_2 = arith.constant 0 : index
    %1 = vector.load %arg2[%c0_1, %c0_2] : memref<8x1xf32, #tpu.memory_space<vmem>>, vector<8x1xf32>
    %2 = vector.broadcast %1 : vector<8x1xf32> to vector<8x256xf32>
    %3 = arith.mulf %0, %2 : vector<8x256xf32>
    %c0_3 = arith.constant 0 : index
    %c0_4 = arith.constant 0 : index
    %4 = vector.load %arg3[%c0_3, %c0_4] : memref<8x1xf32, #tpu.memory_space<vmem>>, vector<8x1xf32>
    %5 = vector.broadcast %4 : vector<8x1xf32> to vector<8x256xf32>
    %6 = arith.addf %3, %5 : vector<8x256xf32>
    %c0_5 = arith.constant 0 : index
    %c0_6 = arith.constant 0 : index
    %7 = vector.load %arg5[%c0_5, %c0_6] : memref<8x256xf32, #tpu.memory_space<vmem>>, vector<8x256xf32>
    tpu.vector_store %arg5[%c0_5, %c0_6], %6 {strides = array<i32>} : memref<8x256xf32, #tpu.memory_space<vmem>>, vector<8x256xf32>,
    return
  }
  func.func @transform_0(%arg0: i32, %arg1: i32) -> (i32, i32) {
    %c0_i32 = arith.constant 0 : i32
    %c0_i32_0 = arith.constant 0 : i32
    return %arg0, %c0_i32 : i32, i32
  }
  func.func @transform_1(%arg0: i32, %arg1: i32) -> (i32, i32) {
    %c0_i32 = arith.constant 0 : i32
    %c0_i32_0 = arith.constant 0 : i32
    return %arg0, %c0_i32 : i32, i32
  }
  func.func @transform_2(%arg0: i32, %arg1: i32) -> (i32, i32) {
    %c0_i32 = arith.constant 0 : i32
    return %arg0, %arg1 : i32, i32
  }
  func.func @transform_3(%arg0: i32, %arg1: i32) -> (i32, i32) {
    %c0_i32 = arith.constant 0 : i32
    return %arg0, %arg1 : i32, i32
  }
}

</mosaic_0001>

<bundles_post_ra>
// kernel: tpu_custom_call.1
= control target key start
LH: loop header
LB: loop body
LE: loop exit
PB: predicated region body
PF: predicated region fallthrough
CT: control target
= control target key end

     0   :  { %s122_s0 = inlined_call_operand.vmem [shape: f32[8,1], index: 0, kind: input, shape index: {}]   ;;  %s123_s1 = inlined_call_operand.vmem [shape: f32[8,1], index: 1, kind: input, shape index: {}]   ;;  %s124_s2 = inlined_call_operand.vmem [shape: f32[8,256], index: 2, kind: input, shape index: {}]   ;;  %s125_s3 = inlined_call_operand.hbm [shape: f32[8,256], index: 3, kind: output, shape index: {}]  }
   0x1   :  { %v17_v0 = vld [vmem:[%s122_s0] sm:$0xff] }
   0x2   :  { %8 = vsyncpa [#allocation3], 0  ;;  %v76_v1 = vmov 0   ;;  %v25_v2 = vld [vmem:[%s123_s1] sm:$0xff]  ;;  %v16_v5 = vld [vmem:[%s124_s2 + $0x8] sm:$0xff]  ;;  %s77_s20 = smov [#allocation2]  }
   0x3   :  { %51 = vset.pattern.permute.xlu0 %v76_v1  ;;  %v15_v4 = vld [vmem:[%s124_s2] sm:$0xff]  ;;  %s41_s0 = sshll.u32 %s77_s20, 4  ;;  %s42_s0 = int_to_ptr.vmem [resolvable:$true] %s41_s0 }
   0x4   :  { %20 = vperm.xlu0 %51, %v17_v0   ;;  %s52_s1 = scalar_lea.vmem %s42_s0, 256  ;;  %p57_p1 = scmp.lt.s32.totalorder %s42_s0, %s42_s0 }
   0x5   :  { %p53_p0 = scmp.ne.s32.totalorder %s42_s0, %s52_s1  ;;  %p58_p2 = scmp.lt.s32.totalorder %s52_s1, %s52_s1 }
   0x7   :  { %p59_p3 = por %p58_p2, %p57_p1 }
   0x8   :  { %28 = vperm.xlu0 %51, %v25_v2  }
   0x9   :  { %p60_p4 = pnand %p59_p3, %p53_p0 }
  0x83   :  { %v21_v3 = vpop.permute.xlu0 %20 }
  0x84   :  { %v23_v6 = vmul.f32 %v21_v3, %v15_v4  ;;  %v24_v7 = vmul.f32 %v21_v3, %v16_v5 }
  0x87   :  { %v29_v8 = vpop.permute.xlu0 %28 }
  0x88   :  { %v31_v9 = vadd.f32 %v29_v8, %v23_v6  ;;  %v32_v10 = vadd.f32 %v29_v8, %v24_v7 }
  0x8a   :  { %33 = vst [vmem:[#allocation2] sm:$0xff] %v31_v9  ;;  %34 = vst [vmem:[#allocation2 + $0x8] sm:$0xff] %v32_v10 }
  0x8b   :  { %63 = shalt.err (!%p60_p4)
}
  0x8c   :  { %s64_s2 = scalar_lea.hbm %s125_s3, 256 }
  0x8d   :  { %p65_p5 = scmp.ne.s32.totalorder %s125_s3, %s64_s2  ;;  %p68_p6 = scmp.lt.u32.totalorder %s64_s2, %s125_s3 }
  0x8f   :  { %p70_p7 = pnand %p68_p6, %p65_p5 }
  0x91   :  { %73 = shalt.err (!%p70_p7)
}
  0x92   :  { %44 = dma.vmem_to_hbm [thread:$0]  %s42_s0, 256, %s125_s3, [#allocation3]  }
  0x93   :  { %74 = dma.done.wait [#allocation3], 256  }
  0x94   :  { %75 = vsyncadd [#allocation3], 4294967040 }
  0x95   :  { %48 = vsyncpa [#allocation3], 1 }

</bundles_post_ra>
